<compile_context>
chip_gen: v5e
topology: v5e:2x2
jax: 0.10.0
libtpu: 0.0.40
codegen_flags: <defaults>
</compile_context>

<pallas_src>
import functools

import jax
import jax.numpy as jnp
from jax import lax
from jax.experimental import pallas as pl
from jax.experimental.pallas import tpu as pltpu


def _round_up(x, m):
    return (x + m - 1) // m * m


def _crra_utility(port_ret, risk_constant):
    """(1 + r)**(1 - risk) / (1 - risk), with an integer-power fast path.

    Note: the integer fast path (exponentiation by squaring) can differ from
    the generic `**` lowering in the last ulps; both are well within 1e-5 of
    the reference for realistic portfolio returns.
    """
    gamma = 1.0 - float(risk_constant)
    base = 1.0 + port_ret
    g_int = int(round(gamma))
    if abs(gamma - g_int) < 1e-9 and g_int != 0 and abs(g_int) <= 16:
        # VPU multiplies only, unrolled at trace time.
        n = abs(g_int)
        acc = None
        p = base
        while n:
            if n & 1:
                acc = p if acc is None else acc * p
            n >>= 1
            if n:
                p = p * p
        powed = acc if g_int > 0 else 1.0 / acc
    else:
        # General (possibly non-integer) exponent; matches the reference
        # (NaN/Inf for non-positive bases, like the PyTorch module).
        powed = base ** gamma
    return powed * (1.0 / gamma)


def _portfolio_kernel(xf_ref, w1_ref, b1_ref, w2_ref, bench_ref, ret_ref,
                      util_ref, r_ref, *, inv_true_n, n_true, risk_constant,
                      neg_slope):
    # xf_ref   : (3, tT, Np) VMEM  feature-major input tile (partial in N/T ok)
    # w1_ref   : (3, 3)      SMEM  first_layer.weight  (out, in)
    # b1_ref   : (3,)        SMEM  first_layer.bias
    # w2_ref   : (3,)        SMEM  weights.weight * (1/number_of_stocks)
    # bench_ref: (1, Np)     VMEM  benchmark (resident; block index constant)
    # ret_ref  : (tT, Np)    VMEM  return_ tile
    # util_ref : (tT, 1)     VMEM  per-row CRRA utility
    # r_ref    : (tT, Np)    VMEM  per-period per-stock return tile
    #
    # Lanes >= n_true and rows past T are "garbage" (partial blocks).  Garbage
    # rows never reach HBM (partial-block writeback covers only valid rows and
    # all math is row-local), garbage lanes are masked below with a select.
    x0 = xf_ref[0].astype(jnp.float32)
    x1 = xf_ref[1].astype(jnp.float32)
    x2 = xf_ref[2].astype(jnp.float32)

    # --- Linear(3, 3) + ReLU, unrolled over the 3 output features (VPU) ---
    h = []
    for j in range(3):
        hj = (x0 * w1_ref[j, 0] + x1 * w1_ref[j, 1] + x2 * w1_ref[j, 2]
              + b1_ref[j])
        h.append(jnp.maximum(hj, 0.0))

    # --- Linear(3, 1, bias=False); 1/N is pre-folded into w2 scalars ---
    s = h[0] * w2_ref[0] + h[1] * w2_ref[1] + h[2] * w2_ref[2]
    # LeakyReLU(0.01) == max(s, 0.01*s)  (valid since the folded scale > 0)
    s = jnp.maximum(s, neg_slope * s)

    # --- portfolio weight = s + benchmark (broadcast over rows) ---
    s = s + bench_ref[...].astype(jnp.float32)          # (tT, Np)

    # --- per-stock return contribution ---
    r = s * ret_ref[...].astype(jnp.float32)            # (tT, Np)

    tile_t, n_pad = r.shape
    if n_true != n_pad:
        # Select (not multiply): garbage lanes may hold NaN/Inf.
        col = lax.broadcasted_iota(jnp.int32, (tile_t, n_pad), 1)
        r = jnp.where(col < n_true, r, 0.0)

    r_ref[...] = r.astype(r_ref.dtype)

    # --- per-row CRRA utility (mean over N via sum * 1/true_N) ---
    port_ret = jnp.sum(r, axis=-1, keepdims=True) * inv_true_n   # (tT, 1)
    util_ref[...] = _crra_utility(port_ret, risk_constant)


def _vmem_limits():
    """Generation-aware (vmem_limit_bytes, tile_budget_bytes)."""
    try:
        cap = int(pltpu.get_tpu_info().vmem_capacity_bytes)
    except Exception:
        cap = 64 * 1024 * 1024          # conservative fallback (v7x per-core)
    # v5e/v6e: 128 MiB physical -> ~96 MiB limit; v7x: 64 MiB -> 48 MiB limit.
    limit = min((cap * 3) // 4, 100 * 1024 * 1024)
    budget = (limit * 3) // 4           # tile-sizing budget; leaves headroom
    return limit, budget


def _choose_tile_t(t, n_pad, x_itemsize, ret_itemsize, out_itemsize,
                   vmem_budget_bytes, quantum=8, max_tile_t=None):
    # Per grid step, double buffered: 3 x-planes + return_ in, r + util out.
    per_row = 2 * (3 * x_itemsize + ret_itemsize + out_itemsize) * n_pad + 2 * 4
    tile = max(quantum,
               (int(vmem_budget_bytes) // per_row) // quantum * quantum)
    if max_tile_t is not None:
        tile = min(tile, max(quantum, (int(max_tile_t) // quantum) * quantum))
    if tile >= t:
        return t                         # single tile; block dim == array dim
    return max(quantum, min(tile, (t // quantum) * quantum))


def parametric_portfolio_forward(x_fm, w1, b1, w2, benchmark, return_,
                                 risk_constant, number_of_stocks,
                                 max_tile_t=None, out_dtype=None,
                                 use_core_parallel=False):
    """Forward pass.

    x_fm: feature-major firm characteristics, shape (3, T, N).  Producing x in
    this layout upstream avoids a standalone (T,N,3)->(3,T,N) HBM relayout.
    x_fm / return_ may be f32 or bf16 (math is always f32 in-kernel).
    Returns (utility scalar f32, r of shape (T, N) in out_dtype).
    """
    if float(number_of_stocks) <= 0:
        raise ValueError("number_of_stocks must be > 0 "
                         "(required for the leaky-ReLU / 1/N scale fold).")
    if abs(1.0 - float(risk_constant)) < 1e-12:
        raise ValueError("risk_constant == 1 makes the CRRA utility undefined "
                         "(division by 1 - risk_constant).")

    _, T, N = x_fm.shape
    n_pad = _round_up(N, 128)            # lane-dense block width; HBM stays (T, N)
    if out_dtype is None:
        out_dtype = return_.dtype

    x_item = jnp.dtype(x_fm.dtype).itemsize
    ret_item = jnp.dtype(return_.dtype).itemsize
    out_item = jnp.dtype(out_dtype).itemsize
    quantum = 8 if min(x_item, ret_item, out_item) >= 4 else 16

    vmem_limit, vmem_budget = _vmem_limits()
    tile_t = _choose_tile_t(T, n_pad, x_item, ret_item, out_item,
                            vmem_budget, quantum=quantum, max_tile_t=max_tile_t)
    grid = (pl.cdiv(T, tile_t),)

    bench2d = jnp.asarray(benchmark, jnp.float32).reshape(1, N)
    w1f = jnp.asarray(w1, jnp.float32).reshape(3, 3)
    b1f = jnp.asarray(b1, jnp.float32).reshape(3)
    # Fold 1/number_of_stocks into the 3 output weights (3 scalars, host side).
    w2f = (jnp.asarray(w2, jnp.float32).reshape(3)
           * jnp.float32(1.0 / float(number_of_stocks)))

    kernel = functools.partial(
        _portfolio_kernel,
        inv_true_n=1.0 / float(N),
        n_true=N,
        risk_constant=float(risk_constant),
        neg_slope=0.01,
    )

    smem = pl.BlockSpec(memory_space=pltpu.MemorySpace.SMEM)
    # TODO(synk): on v7x, profile pltpu.CORE_PARALLEL to confirm both
    # TensorCores are active; plain "parallel" is kept as the safe default.
    dim_sem = ((pltpu.CORE_PARALLEL,) if use_core_parallel else ("parallel",))

    # TODO(synk): if tile_t ends up VMEM-constrained (large N on v7x), sweep
    # pipeline_mode=pl.Buffered(3) on the x / return_ in_specs.
    util_rows, r = pl.pallas_call(
        kernel,
        out_shape=(
            jax.ShapeDtypeStruct((T, 1), jnp.float32),
            jax.ShapeDtypeStruct((T, N), out_dtype),
        ),
        grid_spec=pltpu.PrefetchScalarGridSpec(
            num_scalar_prefetch=0,
            grid=grid,
            in_specs=[
                pl.BlockSpec((3, tile_t, n_pad), lambda i: (0, i, 0)),  # x
                smem,                                                    # W1
                smem,                                                    # b1
                smem,                                                    # w2
                pl.BlockSpec((1, n_pad), lambda i: (0, 0)),              # bench
                pl.BlockSpec((tile_t, n_pad), lambda i: (i, 0)),         # ret
            ],
            out_specs=(
                pl.BlockSpec((tile_t, 1), lambda i: (i, 0)),             # util
                pl.BlockSpec((tile_t, n_pad), lambda i: (i, 0)),         # r
            ),
        ),
        compiler_params=pltpu.CompilerParams(
            dimension_semantics=dim_sem,
            vmem_limit_bytes=vmem_limit,
        ),
    )(x_fm, w1f, b1f, w2f, bench2d, return_)

    # Only valid rows were ever written back (partial blocks), so a plain sum
    # over the (T, 1) per-row utilities finishes the mean over T.
    u = jnp.sum(util_rows) / jnp.float32(T)
    return u, r


def parametric_portfolio_forward_tn3(x, *args, **kwargs):
    """Convenience wrapper for the PyTorch (T, N, 3) layout.

    Prefer producing x feature-major upstream; this transpose is a full extra
    HBM read+write of x and should not be used in production hot paths
    (especially on bandwidth-starved v5e).
    """
    return parametric_portfolio_forward(jnp.transpose(x, (2, 0, 1)),
                                        *args, **kwargs)


def _reference(x, w1, b1, w2, benchmark, return_, risk_constant,
               number_of_stocks):
    h = jax.nn.relu(jnp.einsum('tnk,jk->tnj', x, w1) + b1)
    s = jnp.einsum('tnj,j->tn', h, w2)
    s = jnp.where(s >= 0.0, s, 0.01 * s)
    s = s / number_of_stocks + benchmark
    r = s * return_
    port_ret = jnp.mean(r, axis=-1)
    u = jnp.mean((1.0 + port_ret) ** (1.0 - risk_constant)
                 / (1.0 - risk_constant))
    return u, r


if __name__ == "__main__":
    T, N = 20, 16                     # T periods, N stocks, 3 firm features
    risk_constant = 5.0
    number_of_stocks = N

    key = jax.random.PRNGKey(0)
    kx, kw1, kb1, kw2, kr = jax.random.split(key, 5)

    # Produce x feature-major (3, T, N) directly — no relayout pass needed.
    x_fm = jax.random.normal(kx, (3, T, N), dtype=jnp.float32)
    # Deterministic "PyTorch-like" uniform init for the Linear layers.
    w1 = jax.random.uniform(kw1, (3, 3), jnp.float32, -0.5, 0.5)   # (out, in)
    b1 = jax.random.uniform(kb1, (3,), jnp.float32, -0.5, 0.5)
    w2 = jax.random.uniform(kw2, (3,), jnp.float32, -0.5, 0.5)     # Linear(3,1)
    benchmark = jnp.full((N,), 1.0 / N, dtype=jnp.float32)
    return_ = 0.05 * jax.random.normal(kr, (T, N), dtype=jnp.float32)

    x_tn3 = jnp.transpose(x_fm, (1, 2, 0))        # reference uses (T, N, 3)
    u_ref, r_ref_ = _reference(x_tn3, w1, b1, w2, benchmark, return_,
                               risk_constant, number_of_stocks)

    # 1) Default config: single T tile (block dims == full array dims),
    #    unaligned N handled without any host-side padding or output slice.
    u, r = parametric_portfolio_forward(
        x_fm, w1, b1, w2, benchmark, return_, risk_constant, number_of_stocks)
    jax.block_until_ready((u, r))
    assert jnp.allclose(u, u_ref, rtol=1e-5, atol=1e-5), (u, u_ref)
    assert jnp.allclose(r, r_ref_, rtol=1e-5, atol=1e-5)

    # 2) Forced multi-tile grid with a ragged T tail (tile_t=8 -> 3 tiles,
    #    last one partial) to exercise the pipelined / partial-block path.
    u2, r2 = parametric_portfolio_forward(
        x_fm, w1, b1, w2, benchmark, return_, risk_constant, number_of_stocks,
        max_tile_t=8)
    jax.block_until_ready((u2, r2))
    assert jnp.allclose(u2, u_ref, rtol=1e-5, atol=1e-5), (u2, u_ref)
    assert jnp.allclose(r2, r_ref_, rtol=1e-5, atol=1e-5)

    # 3) bf16 storage path (x / return_ / r in bf16, f32 math in-kernel).
    x_bf = x_fm.astype(jnp.bfloat16)
    ret_bf = return_.astype(jnp.bfloat16)
    u3, r3 = parametric_portfolio_forward(
        x_bf, w1, b1, w2, benchmark, ret_bf, risk_constant, number_of_stocks,
        max_tile_t=16)
    jax.block_until_ready((u3, r3))
    u_ref_bf, r_ref_bf = _reference(
        jnp.transpose(x_bf.astype(jnp.float32), (1, 2, 0)), w1, b1, w2,
        benchmark, ret_bf.astype(jnp.float32), risk_constant, number_of_stocks)
    assert jnp.allclose(u3, u_ref_bf, rtol=1e-3, atol=1e-4), (u3, u_ref_bf)
    assert jnp.allclose(r3.astype(jnp.float32), r_ref_bf, rtol=2e-2, atol=1e-4)

    print("KERNEL_OK")
</pallas_src>

<mosaic_0001>
module attributes {stable_mosaic.version = 11 : i64} {
  func.func @_portfolio_kernel(%arg0: i32, %arg1: memref<3x20x128xf32, #tpu.memory_space<vmem>>, %arg2: memref<3x3xf32, #tpu.memory_space<smem>>, %arg3: memref<3xf32, #tpu.memory_space<smem>>, %arg4: memref<3xf32, #tpu.memory_space<smem>>, %arg5: memref<1x128xf32, #tpu.memory_space<vmem>>, %arg6: memref<20x128xf32, #tpu.memory_space<vmem>>, %arg7: memref<20x1xf32, #tpu.memory_space<vmem>>, %arg8: memref<20x128xf32, #tpu.memory_space<vmem>>) attributes {dimension_semantics = [#tpu.dimension_semantics<parallel>], iteration_bounds = array<i64: 1>, scalar_prefetch = 0 : i64, scratch_operands = 0 : i64, tpu.core_type = #tpu.core_type<tc>, window_params = [{transform_indices = @transform_0, window_bounds = array<i64: 3, 20, 128>}, {transform_indices = @transform_1, window_bounds = array<i64: 3, 3>}, {transform_indices = @transform_2, window_bounds = array<i64: 3>}, {transform_indices = @transform_3, window_bounds = array<i64: 3>}, {transform_indices = @transform_4, window_bounds = array<i64: 1, 128>}, {transform_indices = @transform_5, window_bounds = array<i64: 20, 128>}, {transform_indices = @transform_6, window_bounds = array<i64: 20, 1>}, {transform_indices = @transform_7, window_bounds = array<i64: 20, 128>}]} {
    %c0 = arith.constant 0 : index
    %c0_0 = arith.constant 0 : index
    %c0_1 = arith.constant 0 : index
    %0 = vector.load %arg1[%c0, %c0_0, %c0_1] : memref<3x20x128xf32, #tpu.memory_space<vmem>>, vector<1x20x128xf32>
    %1 = vector.shape_cast %0 : vector<1x20x128xf32> to vector<20x128xf32>
    %c1 = arith.constant 1 : index
    %c0_2 = arith.constant 0 : index
    %c0_3 = arith.constant 0 : index
    %2 = vector.load %arg1[%c1, %c0_2, %c0_3] : memref<3x20x128xf32, #tpu.memory_space<vmem>>, vector<1x20x128xf32>
    %3 = vector.shape_cast %2 : vector<1x20x128xf32> to vector<20x128xf32>
    %c2 = arith.constant 2 : index
    %c0_4 = arith.constant 0 : index
    %c0_5 = arith.constant 0 : index
    %4 = vector.load %arg1[%c2, %c0_4, %c0_5] : memref<3x20x128xf32, #tpu.memory_space<vmem>>, vector<1x20x128xf32>
    %5 = vector.shape_cast %4 : vector<1x20x128xf32> to vector<20x128xf32>
    %c0_6 = arith.constant 0 : index
    %c0_7 = arith.constant 0 : index
    %6 = memref.load %arg2[%c0_6, %c0_7] : memref<3x3xf32, #tpu.memory_space<smem>>
    %7 = vector.broadcast %6 : f32 to vector<20x128xf32>
    %8 = arith.mulf %1, %7 : vector<20x128xf32>
    %c0_8 = arith.constant 0 : index
    %c1_9 = arith.constant 1 : index
    %9 = memref.load %arg2[%c0_8, %c1_9] : memref<3x3xf32, #tpu.memory_space<smem>>
    %10 = vector.broadcast %9 : f32 to vector<20x128xf32>
    %11 = arith.mulf %3, %10 : vector<20x128xf32>
    %12 = arith.addf %8, %11 : vector<20x128xf32>
    %c0_10 = arith.constant 0 : index
    %c2_11 = arith.constant 2 : index
    %13 = memref.load %arg2[%c0_10, %c2_11] : memref<3x3xf32, #tpu.memory_space<smem>>
    %14 = vector.broadcast %13 : f32 to vector<20x128xf32>
    %15 = arith.mulf %5, %14 : vector<20x128xf32>
    %16 = arith.addf %12, %15 : vector<20x128xf32>
    %c0_12 = arith.constant 0 : index
    %17 = memref.load %arg3[%c0_12] : memref<3xf32, #tpu.memory_space<smem>>
    %18 = vector.broadcast %17 : f32 to vector<20x128xf32>
    %19 = arith.addf %16, %18 : vector<20x128xf32>
    %cst = arith.constant 0.000000e+00 : f32
    %20 = vector.broadcast %cst : f32 to vector<20x128xf32>
    %21 = arith.maximumf %19, %20 : vector<20x128xf32>
    %c1_13 = arith.constant 1 : index
    %c0_14 = arith.constant 0 : index
    %22 = memref.load %arg2[%c1_13, %c0_14] : memref<3x3xf32, #tpu.memory_space<smem>>
    %23 = vector.broadcast %22 : f32 to vector<20x128xf32>
    %24 = arith.mulf %1, %23 : vector<20x128xf32>
    %c1_15 = arith.constant 1 : index
    %c1_16 = arith.constant 1 : index
    %25 = memref.load %arg2[%c1_15, %c1_16] : memref<3x3xf32, #tpu.memory_space<smem>>
    %26 = vector.broadcast %25 : f32 to vector<20x128xf32>
    %27 = arith.mulf %3, %26 : vector<20x128xf32>
    %28 = arith.addf %24, %27 : vector<20x128xf32>
    %c1_17 = arith.constant 1 : index
    %c2_18 = arith.constant 2 : index
    %29 = memref.load %arg2[%c1_17, %c2_18] : memref<3x3xf32, #tpu.memory_space<smem>>
    %30 = vector.broadcast %29 : f32 to vector<20x128xf32>
    %31 = arith.mulf %5, %30 : vector<20x128xf32>
    %32 = arith.addf %28, %31 : vector<20x128xf32>
    %c1_19 = arith.constant 1 : index
    %33 = memref.load %arg3[%c1_19] : memref<3xf32, #tpu.memory_space<smem>>
    %34 = vector.broadcast %33 : f32 to vector<20x128xf32>
    %35 = arith.addf %32, %34 : vector<20x128xf32>
    %cst_20 = arith.constant 0.000000e+00 : f32
    %36 = vector.broadcast %cst_20 : f32 to vector<20x128xf32>
    %37 = arith.maximumf %35, %36 : vector<20x128xf32>
    %c2_21 = arith.constant 2 : index
    %c0_22 = arith.constant 0 : index
    %38 = memref.load %arg2[%c2_21, %c0_22] : memref<3x3xf32, #tpu.memory_space<smem>>
    %39 = vector.broadcast %38 : f32 to vector<20x128xf32>
    %40 = arith.mulf %1, %39 : vector<20x128xf32>
    %c2_23 = arith.constant 2 : index
    %c1_24 = arith.constant 1 : index
    %41 = memref.load %arg2[%c2_23, %c1_24] : memref<3x3xf32, #tpu.memory_space<smem>>
    %42 = vector.broadcast %41 : f32 to vector<20x128xf32>
    %43 = arith.mulf %3, %42 : vector<20x128xf32>
    %44 = arith.addf %40, %43 : vector<20x128xf32>
    %c2_25 = arith.constant 2 : index
    %c2_26 = arith.constant 2 : index
    %45 = memref.load %arg2[%c2_25, %c2_26] : memref<3x3xf32, #tpu.memory_space<smem>>
    %46 = vector.broadcast %45 : f32 to vector<20x128xf32>
    %47 = arith.mulf %5, %46 : vector<20x128xf32>
    %48 = arith.addf %44, %47 : vector<20x128xf32>
    %c2_27 = arith.constant 2 : index
    %49 = memref.load %arg3[%c2_27] : memref<3xf32, #tpu.memory_space<smem>>
    %50 = vector.broadcast %49 : f32 to vector<20x128xf32>
    %51 = arith.addf %48, %50 : vector<20x128xf32>
    %cst_28 = arith.constant 0.000000e+00 : f32
    %52 = vector.broadcast %cst_28 : f32 to vector<20x128xf32>
    %53 = arith.maximumf %51, %52 : vector<20x128xf32>
    %c0_29 = arith.constant 0 : index
    %54 = memref.load %arg4[%c0_29] : memref<3xf32, #tpu.memory_space<smem>>
    %55 = vector.broadcast %54 : f32 to vector<20x128xf32>
    %56 = arith.mulf %21, %55 : vector<20x128xf32>
    %c1_30 = arith.constant 1 : index
    %57 = memref.load %arg4[%c1_30] : memref<3xf32, #tpu.memory_space<smem>>
    %58 = vector.broadcast %57 : f32 to vector<20x128xf32>
    %59 = arith.mulf %37, %58 : vector<20x128xf32>
    %60 = arith.addf %56, %59 : vector<20x128xf32>
    %c2_31 = arith.constant 2 : index
    %61 = memref.load %arg4[%c2_31] : memref<3xf32, #tpu.memory_space<smem>>
    %62 = vector.broadcast %61 : f32 to vector<20x128xf32>
    %63 = arith.mulf %53, %62 : vector<20x128xf32>
    %64 = arith.addf %60, %63 : vector<20x128xf32>
    %cst_32 = arith.constant 0.00999999977 : f32
    %65 = vector.broadcast %cst_32 : f32 to vector<20x128xf32>
    %66 = arith.mulf %65, %64 : vector<20x128xf32>
    %67 = arith.maximumf %64, %66 : vector<20x128xf32>
    %c0_33 = arith.constant 0 : index
    %c0_34 = arith.constant 0 : index
    %68 = vector.load %arg5[%c0_33, %c0_34] : memref<1x128xf32, #tpu.memory_space<vmem>>, vector<1x128xf32>
    %69 = vector.broadcast %68 : vector<1x128xf32> to vector<20x128xf32>
    %70 = arith.addf %67, %69 : vector<20x128xf32>
    %c0_35 = arith.constant 0 : index
    %c0_36 = arith.constant 0 : index
    %71 = vector.load %arg6[%c0_35, %c0_36] : memref<20x128xf32, #tpu.memory_space<vmem>>, vector<20x128xf32>
    %72 = arith.mulf %70, %71 : vector<20x128xf32>
    %73 = tpu.iota {dimensions = array<i32: 1>} : vector<20x128xi32>
    %c16_i32 = arith.constant 16 : i32
    %74 = vector.broadcast %c16_i32 : i32 to vector<20x128xi32>
    %75 = arith.cmpi slt, %73, %74 : vector<20x128xi32>
    %cst_37 = arith.constant 0.000000e+00 : f32
    %76 = vector.broadcast %cst_37 : f32 to vector<20x128xf32>
    %77 = arith.select %75, %72, %76 : vector<20x128xi1>, vector<20x128xf32>
    %c0_38 = arith.constant 0 : index
    %c0_39 = arith.constant 0 : index
    %78 = vector.load %arg8[%c0_38, %c0_39] : memref<20x128xf32, #tpu.memory_space<vmem>>, vector<20x128xf32>
    tpu.vector_store %arg8[%c0_38, %c0_39], %77 {strides = array<i32>} : memref<20x128xf32, #tpu.memory_space<vmem>>, vector<20x128xf32>,
    %cst_40 = arith.constant dense<0.000000e+00> : vector<20xf32>
    %79 = vector.multi_reduction <add>, %77, %cst_40 [1] : vector<20x128xf32> to vector<20xf32>
    %80 = vector.shape_cast %79 : vector<20xf32> to vector<20x1xf32>
    %cst_41 = arith.constant 6.250000e-02 : f32
    %81 = vector.broadcast %cst_41 : f32 to vector<20x1xf32>
    %82 = arith.mulf %80, %81 : vector<20x1xf32>
    %cst_42 = arith.constant 1.000000e+00 : f32
    %83 = vector.broadcast %cst_42 : f32 to vector<20x1xf32>
    %84 = arith.addf %83, %82 : vector<20x1xf32>
    %85 = arith.mulf %84, %84 : vector<20x1xf32>
    %86 = arith.mulf %85, %85 : vector<20x1xf32>
    %cst_43 = arith.constant 1.000000e+00 : f32
    %87 = vector.broadcast %cst_43 : f32 to vector<20x1xf32>
    %88 = arith.divf %87, %86 : vector<20x1xf32>
    %cst_44 = arith.constant -2.500000e-01 : f32
    %89 = vector.broadcast %cst_44 : f32 to vector<20x1xf32>
    %90 = arith.mulf %88, %89 : vector<20x1xf32>
    %c0_45 = arith.constant 0 : index
    %c0_46 = arith.constant 0 : index
    %91 = vector.load %arg7[%c0_45, %c0_46] : memref<20x1xf32, #tpu.memory_space<vmem>>, vector<20x1xf32>
    tpu.vector_store %arg7[%c0_45, %c0_46], %90 {strides = array<i32>} : memref<20x1xf32, #tpu.memory_space<vmem>>, vector<20x1xf32>,
    return
  }
  func.func @transform_0(%arg0: i32) -> (i32, i32, i32) {
    %c0_i32 = arith.constant 0 : i32
    %c0_i32_0 = arith.constant 0 : i32
    %c0_i32_1 = arith.constant 0 : i32
    return %c0_i32, %arg0, %c0_i32_0 : i32, i32, i32
  }
  func.func @transform_1(%arg0: i32) -> (i32, i32) {
    %c0_i32 = arith.constant 0 : i32
    %c0_i32_0 = arith.constant 0 : i32
    %c0_i32_1 = arith.constant 0 : i32
    return %c0_i32, %c0_i32_0 : i32, i32
  }
  func.func @transform_2(%arg0: i32) -> i32 {
    %c0_i32 = arith.constant 0 : i32
    %c0_i32_0 = arith.constant 0 : i32
    return %c0_i32 : i32
  }
  func.func @transform_3(%arg0: i32) -> i32 {
    %c0_i32 = arith.constant 0 : i32
    %c0_i32_0 = arith.constant 0 : i32
    return %c0_i32 : i32
  }
  func.func @transform_4(%arg0: i32) -> (i32, i32) {
    %c0_i32 = arith.constant 0 : i32
    %c0_i32_0 = arith.constant 0 : i32
    %c0_i32_1 = arith.constant 0 : i32
    return %c0_i32, %c0_i32_0 : i32, i32
  }
  func.func @transform_5(%arg0: i32) -> (i32, i32) {
    %c0_i32 = arith.constant 0 : i32
    %c0_i32_0 = arith.constant 0 : i32
    return %arg0, %c0_i32 : i32, i32
  }
  func.func @transform_6(%arg0: i32) -> (i32, i32) {
    %c0_i32 = arith.constant 0 : i32
    %c0_i32_0 = arith.constant 0 : i32
    return %arg0, %c0_i32 : i32, i32
  }
  func.func @transform_7(%arg0: i32) -> (i32, i32) {
    %c0_i32 = arith.constant 0 : i32
    %c0_i32_0 = arith.constant 0 : i32
    return %arg0, %c0_i32 : i32, i32
  }
}

</mosaic_0001>

<bundles_post_ra>
// kernel: tpu_custom_call.1
= control target key start
LH: loop header
LB: loop body
LE: loop exit
PB: predicated region body
PF: predicated region fallthrough
CT: control target
= control target key end

     0   :  { %13 = vsyncpa [#allocation3], 0  ;;  %s488_s0 = inlined_call_operand.vmem [shape: f32[3,20,16], index: 0, kind: input, shape index: {}]   ;;  %s489_s1 = inlined_call_operand.vmem [shape: f32[3,3], index: 1, kind: input, shape index: {}]   ;;  %s490_s2 = inlined_call_operand.vmem [shape: f32[3], index: 2, kind: input, shape index: {}]   ;;  %s491_s3 = inlined_call_operand.vmem [shape: f32[3], index: 3, kind: input, shape index: {}]   ;;  %s492_s4 = inlined_call_operand.vmem [shape: f32[1,16], index: 4, kind: input, shape index: {}]   ;;  %s493_s5 = inlined_call_operand.vmem [shape: f32[20,16], index: 5, kind: input, shape index: {}]   ;;  %s494_s6 = inlined_call_operand.vmem [shape: f32[20,1], index: 6, kind: output, shape index: {0}]   ;;  %s495_s7 = inlined_call_operand.vmem [shape: f32[20,16], index: 7, kind: output, shape index: {1}]  }
   0x1   :  { %14 = vsyncpa [#allocation5], 0  ;;  %s31_s26 = sshll.u32 %s490_s2, 4  ;;  %s22_s29 = sshll.u32 %s489_s1, 4  ;;  %s32_s26 = int_to_ptr.vmem [resolvable:$true] %s31_s26  ;;  %s23_s29 = int_to_ptr.vmem [resolvable:$true] %s22_s29 }
   0x2   :  { %s359_s30 = smov [#allocation4]   ;;  %s360_s8 = smov [#allocation2]  }
   0x3   :  { %34 = dma.vmem_to_smem %s32_s26, 16, %s359_s30, [#allocation5]  }
   0x4   :  { %25 = dma.vmem_to_smem %s23_s29, 64, %s360_s8, [#allocation3]  }
   0x5   :  { %s40_s11 = sshll.u32 %s491_s3, 4  ;;  %s361_s12 = smov [#allocation6]   ;;  %s41_s11 = int_to_ptr.vmem [resolvable:$true] %s40_s11 }
   0x6   :  { %43 = dma.vmem_to_smem %s41_s11, 16, %s361_s12, [#allocation5]  }
   0x7   :  { %355 = dma.done.wait [#allocation3], 64  }
   0x8   :  { %356 = vsyncadd [#allocation3], 4294967232 }
   0x9   :  { %357 = dma.done.wait [#allocation5], 32  }
   0xa   :  { %358 = vsyncadd [#allocation5], 4294967264 }
   0xb   :  { %60 = sfence }
   0xc   :  { %s72_s2 = sld [smem:[#allocation2]]  ;;  %v61_v0 = vld [vmem:[%s488_s0] sm:$0xff]  ;;  %v63_v1 = vld [vmem:[%s488_s0 + $0x10] sm:$0xf]  ;;  %v420_v2 = vld [vmem:[%s488_s0 + $0x8] sm:$0xff]  ;;  %vm212_vm1 = vcmask 1043456  }
   0xd   :  { %s297_s13 = sld [smem:[#allocation2 + $0x1]]  ;;  %v291_v3 = vld [vmem:[%s488_s0 + $0x18] sm:$0xff]  ;;  %v293_v4 = vld [vmem:[%s488_s0 + $0x28] sm:$0xf]  ;;  %v294_v5 = vld [vmem:[%s488_s0 + $0x30] sm:$0xff]  ;;  %vm276_vm8 = vcmask 7168  }
   0xe   :  { %s298_s1 = sld [smem:[#allocation2 + $0x2]]  ;;  %v296_v7 = vld [vmem:[%s488_s0 + $0x40] sm:$0xf]  ;;  %v442_v12 = vld [vmem:[%s488_s0 + $0x38] sm:$0xff]  ;;  %vm279_vm11 = vcmask 3072  }
   0xf   :  { %s93_s14 = sld [smem:[#allocation4]]  ;;  %v437_v8 = vld [vmem:[%s488_s0 + $0x20] sm:$0xff] }
  0x10   :  { %s299_s17 = sld [smem:[#allocation2 + $0x80]] }
  0x11   :  { %s300_s23 = sld [smem:[#allocation2 + $0x81]] }
  0x12   :  { %v73_v6 = vstv %s72_s2  ;;  %s301_s28 = sld [smem:[#allocation2 + $0x82]] }
  0x13   :  { %v74_v9 = vmul.f32 %v73_v6, %v61_v0  ;;  %v78_v10 = vstv %s297_s13  ;;  %s302_s10 = sld [smem:[#allocation4 + $0x1]]  ;;  %v76_v11 = vmul.f32 %v73_v6, %v63_v1  ;;  %v75_v13 = vmul.f32 %v73_v6, %v420_v2 }
  0x14   :  { %v79_v14 = vmul.f32 %v291_v3, %v78_v10  ;;  %v86_v15 = vstv %s298_s1  ;;  %s303_s2 = sld [smem:[#allocation2 + $0x100]]  ;;  %v81_v16 = vmul.f32 %v293_v4, %v78_v10  ;;  %v80_v20 = vmul.f32 %v437_v8, %v78_v10 }
  0x15   :  { %v87_v17 = vmul.f32 %v294_v5, %v86_v15  ;;  %v94_v18 = vstv %s93_s14  ;;  %s304_s15 = sld [smem:[#allocation2 + $0x101]]  ;;  %v89_v19 = vmul.f32 %v296_v7, %v86_v15  ;;  %v88_v24 = vmul.f32 %v442_v12, %v86_v15 }
  0x16   :  { %v82_v21 = vadd.f32 %v79_v14, %v74_v9  ;;  %v102_v22 = vstv %s299_s17  ;;  %s305_s13 = sld [smem:[#allocation2 + $0x102]]  ;;  %v84_v23 = vadd.f32 %v81_v16, %v76_v11  ;;  %v83_v28 = vadd.f32 %v80_v20, %v75_v13 }
  0x17   :  { %v103_v25 = vmul.f32 %v102_v22, %v61_v0  ;;  %v107_v26 = vstv %s300_s23  ;;  %s306_s0 = sld [smem:[#allocation4 + $0x2]]  ;;  %v105_v27 = vmul.f32 %v102_v22, %v63_v1 }
  0x18   :  { %v90_v29 = vadd.f32 %v87_v17, %v82_v21  ;;  %v108_v30 = vmul.f32 %v291_v3, %v107_v26  ;;  %v115_v31 = vstv %s301_s28  ;;  %s159_s1 = sld [smem:[#allocation6]]  ;;  %v92_v32 = vadd.f32 %v89_v19, %v84_v23 }
  0x19   :  { %v116_v33 = vmul.f32 %v294_v5, %v115_v31  ;;  %v123_v34 = vstv %s302_s10  ;;  %s307_s14 = sld [smem:[#allocation6 + $0x1]]  ;;  %v110_v35 = vmul.f32 %v293_v4, %v107_v26  ;;  %v118_v36 = vmul.f32 %v296_v7, %v115_v31 }
  0x1a   :  { %v95_v37 = vadd.f32 %v94_v18, %v90_v29  ;;  %v111_v38 = vadd.f32 %v108_v30, %v103_v25  ;;  %v131_v39 = vstv %s303_s2  ;;  %s308_s16 = sld [smem:[#allocation6 + $0x2]]  ;;  %v97_v40 = vadd.f32 %v94_v18, %v92_v32 }
  0x1b   :  { %v132_v41 = vmul.f32 %v131_v39, %v61_v0  ;;  %v136_v42 = vstv %s304_s15  ;;  %v113_v43 = vadd.f32 %v110_v35, %v105_v27  ;;  %v134_v44 = vmul.f32 %v131_v39, %v63_v1 }
  0x1c   :  { %v98_v45 = vmax.f32 %v95_v37, 0.0  ;;  %v119_v46 = vadd.f32 %v116_v33, %v111_v38  ;;  %v137_v47 = vmul.f32 %v291_v3, %v136_v42  ;;  %v144_v48 = vstv %s305_s13  ;;  %v312_v33 = vld [vmem:[%s492_s4] ss:$0 sm:$0xff] }
  0x1d   :  { %v145_v49 = vmul.f32 %v294_v5, %v144_v48  ;;  %v152_v50 = vstv %s306_s0  ;;  %v100_v51 = vmax.f32 %v97_v40, 0.0  ;;  %v121_v52 = vadd.f32 %v118_v36, %v113_v43 }
  0x1e   :  { %v124_v53 = vadd.f32 %v123_v34, %v119_v46  ;;  %v140_v54 = vadd.f32 %v137_v47, %v132_v41  ;;  %v160_v55 = vstv %s159_s1  ;;  %v139_v56 = vmul.f32 %v293_v4, %v136_v42  ;;  %v193_v41 = vld [vmem:[%s493_s5] sm:$0xff] }
  0x1f   :  { %v161_v57 = vmul.f32 %v160_v55, %v98_v45  ;;  %v165_v58 = vstv %s307_s14  ;;  %v126_v59 = vadd.f32 %v123_v34, %v121_v52  ;;  %v147_v60 = vmul.f32 %v296_v7, %v144_v48  ;;  %v195_v45 = vld [vmem:[%s493_s5 + $0x10] sm:$0xf] }
  0x20   :  { %v127_v61 = vmax.f32 %v124_v53, 0.0  ;;  %v148_v62 = vadd.f32 %v145_v49, %v140_v54  ;;  %v173_v63 = vstv %s308_s16  ;;  %v142_v0 = vadd.f32 %v139_v56, %v134_v44  ;;  %v194_v56 = vld [vmem:[%s493_s5 + $0x8] sm:$0xff] }
  0x21   :  { %v129_v1 = vmax.f32 %v126_v59, 0.0  ;;  %v163_v6 = vmul.f32 %v160_v55, %v100_v51  ;;  %v91_v3 = vadd.f32 %v88_v24, %v83_v28  ;;  %v104_v5 = vmul.f32 %v102_v22, %v420_v2 }
  0x22   :  { %v153_v9 = vadd.f32 %v152_v50, %v148_v62  ;;  %v166_v10 = vmul.f32 %v165_v58, %v127_v61  ;;  %v150_v11 = vadd.f32 %v147_v60, %v142_v0  ;;  %v109_v13 = vmul.f32 %v437_v8, %v107_v26 }
  0x23   :  { %v168_v14 = vmul.f32 %v165_v58, %v129_v1  ;;  %v96_v4 = vadd.f32 %v94_v18, %v91_v3  ;;  %v117_v15 = vmul.f32 %v442_v12, %v115_v31  ;;  %v133_v7 = vmul.f32 %v131_v39, %v420_v2 }
  0x24   :  { %v156_v16 = vmax.f32 %v153_v9, 0.0  ;;  %v169_v17 = vadd.f32 %v166_v10, %v161_v57  ;;  %v155_v19 = vadd.f32 %v152_v50, %v150_v11  ;;  %v112_v20 = vadd.f32 %v109_v13, %v104_v5 }
  0x25   :  { %v171_v21 = vadd.f32 %v168_v14, %v163_v6  ;;  %v138_v23 = vmul.f32 %v437_v8, %v136_v42  ;;  %v146_v22 = vmul.f32 %v442_v12, %v144_v48  ;;  %v99_v27 = vmax.f32 %v96_v4, 0.0 }
  0x26   :  { %v174_v24 = vmul.f32 %v173_v63, %v156_v16  ;;  %v158_v25 = vmax.f32 %v155_v19, 0.0  ;;  %v120_v28 = vadd.f32 %v117_v15, %v112_v20  ;;  %v199_v26 = vlaneseq }
  0x27   :  { %v141_v29 = vadd.f32 %v138_v23, %v133_v7  ;;  %v162_v8 = vmul.f32 %v160_v55, %v99_v27 }
  0x28   :  { %v177_v18 = vadd.f32 %v174_v24, %v169_v17  ;;  %v176_v30 = vmul.f32 %v173_v63, %v158_v25  ;;  %v125_v31 = vadd.f32 %v123_v34, %v120_v28  ;;  %v200_v37 = vand.u32 127, %v199_v26 }
  0x29   :  { %v149_v32 = vadd.f32 %v146_v22, %v141_v29 }
  0x2a   :  { %v180_v2 = vmul.f32 0.01, %v177_v18  ;;  %v179_v35 = vadd.f32 %v176_v30, %v171_v21  ;;  %v128_v36 = vmax.f32 %v125_v31, 0.0  ;;  %vm201_vm0 = vcmp.lt.s32.totalorder %v200_v37, 16 }
  0x2b   :  { %v154_v12 = vadd.f32 %v152_v50, %v149_v32 }
  0x2c   :  { %v183_v38 = vmax.f32 %v177_v18, %v180_v2  ;;  %v182_v39 = vmul.f32 0.01, %v179_v35  ;;  %v167_v40 = vmul.f32 %v165_v58, %v128_v36 }
  0x2d   :  { %v157_v42 = vmax.f32 %v154_v12, 0.0 }
  0x2e   :  { %v190_v34 = vadd.f32 %v312_v33, %v183_v38  ;;  %v185_v43 = vmax.f32 %v179_v35, %v182_v39  ;;  %v170_v44 = vadd.f32 %v167_v40, %v162_v8 }
  0x2f   :  { %v175_v46 = vmul.f32 %v173_v63, %v157_v42 }
  0x30   :  { %v196_v47 = vmul.f32 %v193_v41, %v190_v34  ;;  %v192_v48 = vadd.f32 %v312_v33, %v185_v43 }
  0x31   :  { %v178_v49 = vadd.f32 %v175_v46, %v170_v44 }
  0x32   :  { %v202_v50 = vsel %vm201_vm0, %v196_v47, 0.0  ;;  %v198_v51 = vmul.f32 %v195_v45, %v192_v48 }
  0x33   :  { %208 = vadd.xlane.f32.xlu0 %v202_v50  ;;  %205 = vst [vmem:[%s495_s7] sm:$0xff] %v202_v50  ;;  %v181_v52 = vmul.f32 0.01, %v178_v49 }
  0x34   :  { %v204_v53 = vsel %vm201_vm0, %v198_v51, 0.0 }
  0x35   :  { %v213_v54 = vsel %vm212_vm1, %v204_v53, 0.0  ;;  %207 = vst [vmem:[%s495_s7 + $0x10] sm:$0xf] %v204_v53  ;;  %v184_v55 = vmax.f32 %v178_v49, %v181_v52 }
  0x36   :  { %214 = vadd.xlane.f32.xlu1 %v213_v54 }
  0x37   :  { %v191_v57 = vadd.f32 %v312_v33, %v184_v55 }
  0x39   :  { %v197_v58 = vmul.f32 %v194_v56, %v191_v57 }
  0x3b   :  { %v203_v59 = vsel %vm201_vm0, %v197_v58, 0.0 }
  0x3c   :  { %206 = vst [vmem:[%s495_s7 + $0x8] sm:$0xff] %v203_v59  ;;  %210 = vadd.xlane.f32.xlu0 %v203_v59 }
  0xa6   :  { %v209_v60 = vpop.xlane.xlu0 %208 }
  0xa7   :  { %v216_v61 = vmul.f32 0.0625, %v209_v60 }
  0xa9   :  { %v219_v62 = vadd.f32 1.0, %v216_v61  ;;  %v215_v63 = vpop.xlane.xlu1 %214 }
  0xaa   :  { %v218_v0 = vmul.f32 0.0625, %v215_v63 }
  0xab   :  { %v222_v1 = vmul.f32 %v219_v62, %v219_v62 }
  0xac   :  { %v221_v6 = vadd.f32 1.0, %v218_v0 }
  0xad   :  { %v225_v3 = vmul.f32 %v222_v1, %v222_v1 }
  0xae   :  { %v224_v5 = vmul.f32 %v221_v6, %v221_v6 }
  0xaf   :  { %313 = vrcp.f32 %v225_v3  ;;  %v211_v9 = vpop.xlane.xlu0 %210  ;;  %v239_v19 = vand.u32 2147483648, %v225_v3  ;;  %v237_v23 = vand.u32 2147483647, %v225_v3  ;;  %vm233_vm3 = vweird.f32 %v225_v3 }
  0xb0   :  { %v227_v10 = vmul.f32 %v224_v5, %v224_v5  ;;  %v217_v11 = vmul.f32 0.0625, %v211_v9 }
  0xb1   :  { %v240_v25 = vor.u32 1.1754944e-38, %v239_v19  ;;  %vm238_vm7 = vcmp.eq.f32.partialorder %v237_v23, 8.507059e+37 }
  0xb2   :  { %315 = vrcp.f32 %v227_v10  ;;  %v220_v13 = vadd.f32 1.0, %v217_v11  ;;  %v269_v27 = vand.u32 2147483648, %v227_v10  ;;  %vm263_vm5 = vweird.f32 %v227_v10 }
  0xb3   :  { %v267_v26 = vand.u32 2147483647, %v227_v10 }
  0xb4   :  { %v223_v4 = vmul.f32 %v220_v13, %v220_v13  ;;  %v270_v2 = vor.u32 1.1754944e-38, %v269_v27 }
  0xb5   :  { %v314_v14 = vpop.eup %313  ;;  %vm268_vm10 = vcmp.eq.f32.partialorder %v267_v26, 8.507059e+37 }
  0xb6   :  { %v229_v15 = vmul.f32 %v314_v14, %v225_v3  ;;  %v226_v7 = vmul.f32 %v223_v4, %v223_v4  ;;  %vm234_vm2 = vweird.f32 %v314_v14 }
  0xb7   :  { %vm235_vm4 = vmor %vm233_vm3, %vm234_vm2 }
  0xb8   :  { %v316_v16 = vpop.eup %315  ;;  %v230_v17 = vsub.f32 1.0, %v229_v15  ;;  %317 = vrcp.f32 %v226_v7  ;;  %v254_v12 = vand.u32 2147483648, %v226_v7  ;;  %v252_v39 = vand.u32 2147483647, %v226_v7 }
  0xb9   :  { %v259_v20 = vmul.f32 %v316_v16, %v227_v10  ;;  %vm264_vm6 = vweird.f32 %v316_v16  ;;  %vm248_vm13 = vweird.f32 %v226_v7 }
  0xba   :  { %v231_v21 = vmul.f32 %v314_v14, %v230_v17  ;;  %vm265_vm9 = vmor %vm263_vm5, %vm264_vm6  ;;  %v255_v41 = vor.u32 1.1754944e-38, %v254_v12  ;;  %vm253_vm15 = vcmp.eq.f32.partialorder %v252_v39, 8.507059e+37 }
  0xbb   :  { %v260_v22 = vsub.f32 1.0, %v259_v20 }
  0xbc   :  { %v232_v24 = vadd.f32 %v314_v14, %v231_v21 }
  0xbd   :  { %v261_v28 = vmul.f32 %v316_v16, %v260_v22 }
  0xbe   :  { %v236_v29 = vsel %vm235_vm4, %v314_v14, %v232_v24  ;;  %v318_v18 = vpop.eup %317 }
  0xbf   :  { %v241_v30 = vsel %vm238_vm7, %v240_v25, %v236_v29  ;;  %v262_v31 = vadd.f32 %v316_v16, %v261_v28  ;;  %v244_v33 = vmul.f32 %v318_v18, %v226_v7  ;;  %vm249_vm12 = vweird.f32 %v318_v18 }
  0xc0   :  { %v273_v32 = vmul.f32 -0.25, %v241_v30  ;;  %vm250_vm14 = vmor %vm248_vm13, %vm249_vm12 }
  0xc1   :  { %v266_v35 = vsel %vm265_vm9, %v316_v16, %v262_v31  ;;  %v245_v8 = vsub.f32 1.0, %v244_v33 }
  0xc2   :  { %277 = vst.msk [vmem:[%s494_s6] sm:$0xff] %vm276_vm8, %v273_v32  ;;  %v271_v36 = vsel %vm268_vm10, %v270_v2, %v266_v35 }
  0xc3   :  { %v275_v37 = vmul.f32 -0.25, %v271_v36  ;;  %v246_v38 = vmul.f32 %v318_v18, %v245_v8 }
  0xc5   :  { %280 = vst.msk [vmem:[%s494_s6 + $0x10] sm:$0xf] %vm279_vm11, %v275_v37  ;;  %v247_v40 = vadd.f32 %v318_v18, %v246_v38 }
  0xc7   :  { %v251_v42 = vsel %vm250_vm14, %v318_v18, %v247_v40 }
  0xc8   :  { %v256_v34 = vsel %vm253_vm15, %v255_v41, %v251_v42 }
  0xc9   :  { %v274_v43 = vmul.f32 -0.25, %v256_v34 }
  0xcb   :  { %278 = vst.msk [vmem:[%s494_s6 + $0x8] sm:$0xff] %vm276_vm8, %v274_v43 }
  0xcc   :  { %289 = vsyncpa [#allocation3], 1 }
  0xcd   :  { %290 = vsyncpa [#allocation5], 1 }

</bundles_post_ra>
